<compile_context>
chip_gen: v7x
topology: tpu7x:2x2x1
jax: 0.10.0
libtpu: 0.0.40
codegen_flags: <defaults>
</compile_context>

<pallas_src>
import jax
import jax.numpy as jnp
from jax.experimental import pallas as pl
from jax.experimental.pallas import tpu as pltpu

LANES = 128
SUBLANES = 8
MAX_ROWS_PER_STEP = 256   # 256 rows x 128 lanes = 32768 batch elems / grid step
                          # -> (3,256,128) f32 + (256,128) i32 = 512 KiB / step,
                          #    ~1 MiB double-buffered: fits scoped VMEM on v5e/v6e/v7x.


def _nll_loss_kernel(pred_ref, tgt_ref, w_ref, out_ref, num_acc, den_acc):
    # pred_ref: (3, TR, 128) f32  log-probs; class on the leading axis, batch
    #                             packed onto (sublane, lane) = (TR, 128).
    # tgt_ref:  (TR, 128)    i32  target class per batch element (4 == padding).
    # w_ref:    (4,)         f32  SMEM per-class weights.
    # out_ref:  (1, 1)       f32  scalar loss, written on the last grid step.
    # num_acc/den_acc: (TR, 128) f32 VMEM accumulators (per-lane; no per-step XLU).
    pid = pl.program_id(0)

    @pl.when(pid == 0)
    def _init():
        num_acc[...] = jnp.zeros_like(num_acc)
        den_acc[...] = jnp.zeros_like(den_acc)

    t = tgt_ref[...]                       # (TR, 128) i32
    p0 = pred_ref[0]                       # (TR, 128) f32, dense vregs
    p1 = pred_ref[1]
    p2 = pred_ref[2]

    w0 = w_ref[0]
    w1 = w_ref[1]
    w2 = w_ref[2]
    w3 = w_ref[3]

    zero = jnp.float32(0.0)
    # Weighted picked log-prob.  Class 3 is the appended all-zeros column
    # (its contribution is w3 * 0 == 0); class 4 is the batch-padding sentinel.
    v_t = jnp.where(t == 0, w0 * p0,
          jnp.where(t == 1, w1 * p1,
          jnp.where(t == 2, w2 * p2, zero)))
    # Weight of the target class.  The padding sentinel (t == 4) falls through
    # to 0, so padded columns contribute to neither numerator nor denominator
    # even if a custom weight vector has w[3] != 0.
    w_t = jnp.where(t == 0, w0,
          jnp.where(t == 1, w1,
          jnp.where(t == 2, w2,
          jnp.where(t == 3, w3, zero))))

    # Dense per-lane accumulation only; defer all cross-lane work to the end.
    num_acc[...] += v_t
    den_acc[...] += w_t

    @pl.when(pid == pl.num_programs(0) - 1)
    def _finalize():
        num = jnp.sum(num_acc[...], keepdims=True)     # (1, 1)
        den = jnp.sum(den_acc[...], keepdims=True)     # (1, 1)
        out_ref[...] = -(num / den)                    # loss = -sum(w*p)/sum(w)


def get_loss_pallas(pred, target, weight=None):
    """pred: (B, 3) f32 log-probs, target: (B,) int in [0, 4)."""
    if weight is None:
        weight = jnp.array([1.0, 1.3, 6.4, 0.0], dtype=jnp.float32)
    weight = jnp.asarray(weight, dtype=jnp.float32).reshape(4)

    B, C = pred.shape
    assert C == 3, "get_loss expects 3-class pred (a zero 4th class is appended)"

    # Pack the batch onto (rows, 128 lanes); rows padded to a sublane multiple
    # (and, when tiled, to the per-step row count) so every block is (8,128)-legal.
    rows = -(-B // LANES)
    rows = max(SUBLANES, -(-rows // SUBLANES) * SUBLANES)
    if rows <= MAX_ROWS_PER_STEP:
        tr = rows                                   # single grid step
    else:
        tr = MAX_ROWS_PER_STEP
        rows = -(-rows // tr) * tr
    bp = rows * LANES

    # cast + transpose + pad + reshape is one relayout pass over pred that XLA
    # fuses into a single copy; eliminating it entirely would require the
    # upstream log_softmax producer to emit class-major (3, B) output.
    pred_t = jnp.transpose(pred.astype(jnp.float32))            # (3, B)
    tgt = target.astype(jnp.int32)
    if bp != B:
        pred_t = jnp.pad(pred_t, ((0, 0), (0, bp - B)))
        tgt = jnp.pad(tgt, (0, bp - B), constant_values=4)      # sentinel: 0 weight, 0 value
    pred_r = pred_t.reshape(3, rows, LANES)                     # zero-copy reshapes
    tgt_r = tgt.reshape(rows, LANES)

    out = pl.pallas_call(
        _nll_loss_kernel,
        out_shape=jax.ShapeDtypeStruct((1, 1), jnp.float32),
        grid=(rows // tr,),
        in_specs=[
            pl.BlockSpec((3, tr, LANES), lambda i: (0, i, 0)),          # pred (3, rows, 128)
            pl.BlockSpec((tr, LANES), lambda i: (i, 0)),                # target (rows, 128)
            pl.BlockSpec(memory_space=pltpu.MemorySpace.SMEM),          # weight (4,)
        ],
        out_specs=pl.BlockSpec((1, 1), lambda i: (0, 0)),
        scratch_shapes=[
            pltpu.VMEM((tr, LANES), jnp.float32),   # numerator accumulator
            pltpu.VMEM((tr, LANES), jnp.float32),   # denominator accumulator
        ],
        compiler_params=pltpu.CompilerParams(
            dimension_semantics=("arbitrary",)),
    )(pred_r, tgt_r, weight)
    return out[0, 0]


def get_loss_ref(pred, target, weight=None):
    """Pure-JAX reference mirroring the PyTorch module."""
    if weight is None:
        weight = jnp.array([1.0, 1.3, 6.4, 0.0], dtype=jnp.float32)
    B, _ = pred.shape
    pred_cat = jnp.concatenate([pred, jnp.zeros((B, 1), pred.dtype)], axis=-1)
    w_t = weight[target]                       # (B,)
    p_t = pred_cat[jnp.arange(B), target]      # (B,)
    return jnp.sum(-w_t * p_t) / jnp.sum(w_t)


if __name__ == "__main__":
    key = jax.random.PRNGKey(0)
    k1, k2 = jax.random.split(key)

    B = 8
    # pred: log-softmax over 3 classes (typical upstream producer)
    logits = jax.random.normal(k1, (B, 3), dtype=jnp.float32)
    pred = jax.nn.log_softmax(logits, axis=-1)
    # targets in [0, 4): class 3 corresponds to the appended zero column / zero weight
    target = jax.random.randint(k2, (B,), 0, 4, dtype=jnp.int32)

    loss = get_loss_pallas(pred, target)
    loss = jax.block_until_ready(loss)

    ref = get_loss_ref(pred, target)
    assert jnp.allclose(loss, ref, rtol=1e-5, atol=1e-6), (loss, ref)
    print("KERNEL_OK")
</pallas_src>

<mosaic_0001>
module attributes {stable_mosaic.version = 11 : i64} {
  func.func @_nll_loss_kernel(%arg0: i32, %arg1: memref<3x8x128xf32, #tpu.memory_space<vmem>>, %arg2: memref<8x128xi32, #tpu.memory_space<vmem>>, %arg3: memref<4xf32, #tpu.memory_space<smem>>, %arg4: memref<1x1xf32, #tpu.memory_space<vmem>>, %arg5: memref<8x128xf32, #tpu.memory_space<vmem>>, %arg6: memref<8x128xf32, #tpu.memory_space<vmem>>) attributes {dimension_semantics = [#tpu.dimension_semantics<arbitrary>], iteration_bounds = array<i64: 1>, scalar_prefetch = 0 : i64, scratch_operands = 2 : i64, tpu.core_type = #tpu.core_type<tc>, window_params = [{transform_indices = @transform_0, window_bounds = array<i64: 3, 8, 128>}, {transform_indices = @transform_1, window_bounds = array<i64: 8, 128>}, {transform_indices = @transform_2, window_bounds = array<i64: 4>}, {pipeline_mode = #tpu.pipeline_mode<synchronous>, transform_indices = @transform_3, window_bounds = array<i64: 1, 1>}]} {
    %c0_i32 = arith.constant 0 : i32
    %0 = arith.cmpi eq, %arg0, %c0_i32 : i32
    %1 = arith.extui %0 : i1 to i32
    %c0_i32_0 = arith.constant 0 : i32
    %2 = arith.cmpi ne, %1, %c0_i32_0 : i32
    scf.if %2 {
      %cst_27 = arith.constant 0.000000e+00 : f32
      %56 = vector.broadcast %cst_27 : f32 to vector<8x128xf32>
      %c0_28 = arith.constant 0 : index
      %c0_29 = arith.constant 0 : index
      %57 = vector.load %arg5[%c0_28, %c0_29] : memref<8x128xf32, #tpu.memory_space<vmem>>, vector<8x128xf32>
      tpu.vector_store %arg5[%c0_28, %c0_29], %56 {strides = array<i32>} : memref<8x128xf32, #tpu.memory_space<vmem>>, vector<8x128xf32>,
      %cst_30 = arith.constant 0.000000e+00 : f32
      %58 = vector.broadcast %cst_30 : f32 to vector<8x128xf32>
      %c0_31 = arith.constant 0 : index
      %c0_32 = arith.constant 0 : index
      %59 = vector.load %arg6[%c0_31, %c0_32] : memref<8x128xf32, #tpu.memory_space<vmem>>, vector<8x128xf32>
      tpu.vector_store %arg6[%c0_31, %c0_32], %58 {strides = array<i32>} : memref<8x128xf32, #tpu.memory_space<vmem>>, vector<8x128xf32>,
    } else {
    }
    %c0 = arith.constant 0 : index
    %c0_1 = arith.constant 0 : index
    %3 = vector.load %arg2[%c0, %c0_1] : memref<8x128xi32, #tpu.memory_space<vmem>>, vector<8x128xi32>
    %c0_2 = arith.constant 0 : index
    %c0_3 = arith.constant 0 : index
    %c0_4 = arith.constant 0 : index
    %4 = vector.load %arg1[%c0_2, %c0_3, %c0_4] : memref<3x8x128xf32, #tpu.memory_space<vmem>>, vector<1x8x128xf32>
    %5 = vector.shape_cast %4 : vector<1x8x128xf32> to vector<8x128xf32>
    %c1 = arith.constant 1 : index
    %c0_5 = arith.constant 0 : index
    %c0_6 = arith.constant 0 : index
    %6 = vector.load %arg1[%c1, %c0_5, %c0_6] : memref<3x8x128xf32, #tpu.memory_space<vmem>>, vector<1x8x128xf32>
    %7 = vector.shape_cast %6 : vector<1x8x128xf32> to vector<8x128xf32>
    %c2 = arith.constant 2 : index
    %c0_7 = arith.constant 0 : index
    %c0_8 = arith.constant 0 : index
    %8 = vector.load %arg1[%c2, %c0_7, %c0_8] : memref<3x8x128xf32, #tpu.memory_space<vmem>>, vector<1x8x128xf32>
    %9 = vector.shape_cast %8 : vector<1x8x128xf32> to vector<8x128xf32>
    %c0_9 = arith.constant 0 : index
    %10 = memref.load %arg3[%c0_9] : memref<4xf32, #tpu.memory_space<smem>>
    %c1_10 = arith.constant 1 : index
    %11 = memref.load %arg3[%c1_10] : memref<4xf32, #tpu.memory_space<smem>>
    %c2_11 = arith.constant 2 : index
    %12 = memref.load %arg3[%c2_11] : memref<4xf32, #tpu.memory_space<smem>>
    %c3 = arith.constant 3 : index
    %13 = memref.load %arg3[%c3] : memref<4xf32, #tpu.memory_space<smem>>
    %c0_i32_12 = arith.constant 0 : i32
    %14 = vector.broadcast %c0_i32_12 : i32 to vector<8x128xi32>
    %15 = arith.cmpi eq, %3, %14 : vector<8x128xi32>
    %16 = vector.broadcast %10 : f32 to vector<8x128xf32>
    %17 = arith.mulf %16, %5 : vector<8x128xf32>
    %c1_i32 = arith.constant 1 : i32
    %18 = vector.broadcast %c1_i32 : i32 to vector<8x128xi32>
    %19 = arith.cmpi eq, %3, %18 : vector<8x128xi32>
    %20 = vector.broadcast %11 : f32 to vector<8x128xf32>
    %21 = arith.mulf %20, %7 : vector<8x128xf32>
    %c2_i32 = arith.constant 2 : i32
    %22 = vector.broadcast %c2_i32 : i32 to vector<8x128xi32>
    %23 = arith.cmpi eq, %3, %22 : vector<8x128xi32>
    %24 = vector.broadcast %12 : f32 to vector<8x128xf32>
    %25 = arith.mulf %24, %9 : vector<8x128xf32>
    %cst = arith.constant 0.000000e+00 : f32
    %26 = vector.broadcast %cst : f32 to vector<8x128xf32>
    %27 = arith.select %23, %25, %26 : vector<8x128xi1>, vector<8x128xf32>
    %28 = arith.select %19, %21, %27 : vector<8x128xi1>, vector<8x128xf32>
    %29 = arith.select %15, %17, %28 : vector<8x128xi1>, vector<8x128xf32>
    %c0_i32_13 = arith.constant 0 : i32
    %30 = vector.broadcast %c0_i32_13 : i32 to vector<8x128xi32>
    %31 = arith.cmpi eq, %3, %30 : vector<8x128xi32>
    %c1_i32_14 = arith.constant 1 : i32
    %32 = vector.broadcast %c1_i32_14 : i32 to vector<8x128xi32>
    %33 = arith.cmpi eq, %3, %32 : vector<8x128xi32>
    %c2_i32_15 = arith.constant 2 : i32
    %34 = vector.broadcast %c2_i32_15 : i32 to vector<8x128xi32>
    %35 = arith.cmpi eq, %3, %34 : vector<8x128xi32>
    %c3_i32 = arith.constant 3 : i32
    %36 = vector.broadcast %c3_i32 : i32 to vector<8x128xi32>
    %37 = arith.cmpi eq, %3, %36 : vector<8x128xi32>
    %cst_16 = arith.constant 0.000000e+00 : f32
    %38 = vector.broadcast %13 : f32 to vector<8x128xf32>
    %39 = vector.broadcast %cst_16 : f32 to vector<8x128xf32>
    %40 = arith.select %37, %38, %39 : vector<8x128xi1>, vector<8x128xf32>
    %41 = vector.broadcast %12 : f32 to vector<8x128xf32>
    %42 = arith.select %35, %41, %40 : vector<8x128xi1>, vector<8x128xf32>
    %43 = vector.broadcast %11 : f32 to vector<8x128xf32>
    %44 = arith.select %33, %43, %42 : vector<8x128xi1>, vector<8x128xf32>
    %45 = vector.broadcast %10 : f32 to vector<8x128xf32>
    %46 = arith.select %31, %45, %44 : vector<8x128xi1>, vector<8x128xf32>
    %c0_17 = arith.constant 0 : index
    %c0_18 = arith.constant 0 : index
    %47 = vector.load %arg5[%c0_17, %c0_18] : memref<8x128xf32, #tpu.memory_space<vmem>>, vector<8x128xf32>
    %48 = arith.addf %47, %29 : vector<8x128xf32>
    %c0_19 = arith.constant 0 : index
    %c0_20 = arith.constant 0 : index
    %49 = vector.load %arg5[%c0_19, %c0_20] : memref<8x128xf32, #tpu.memory_space<vmem>>, vector<8x128xf32>
    tpu.vector_store %arg5[%c0_19, %c0_20], %48 {strides = array<i32>} : memref<8x128xf32, #tpu.memory_space<vmem>>, vector<8x128xf32>,
    %c0_21 = arith.constant 0 : index
    %c0_22 = arith.constant 0 : index
    %50 = vector.load %arg6[%c0_21, %c0_22] : memref<8x128xf32, #tpu.memory_space<vmem>>, vector<8x128xf32>
    %51 = arith.addf %50, %46 : vector<8x128xf32>
    %c0_23 = arith.constant 0 : index
    %c0_24 = arith.constant 0 : index
    %52 = vector.load %arg6[%c0_23, %c0_24] : memref<8x128xf32, #tpu.memory_space<vmem>>, vector<8x128xf32>
    tpu.vector_store %arg6[%c0_23, %c0_24], %51 {strides = array<i32>} : memref<8x128xf32, #tpu.memory_space<vmem>>, vector<8x128xf32>,
    %c0_i32_25 = arith.constant 0 : i32
    %53 = arith.cmpi eq, %arg0, %c0_i32_25 : i32
    %54 = arith.extui %53 : i1 to i32
    %c0_i32_26 = arith.constant 0 : i32
    %55 = arith.cmpi ne, %54, %c0_i32_26 : i32
    scf.if %55 {
      %c0_27 = arith.constant 0 : index
      %c0_28 = arith.constant 0 : index
      %56 = vector.load %arg5[%c0_27, %c0_28] : memref<8x128xf32, #tpu.memory_space<vmem>>, vector<8x128xf32>
      %57 = vector.shape_cast %56 : vector<8x128xf32> to vector<1x8x128xf32>
      %cst_29 = arith.constant dense<0.000000e+00> : vector<1xf32>
      %58 = vector.multi_reduction <add>, %57, %cst_29 [1, 2] : vector<1x8x128xf32> to vector<1xf32>
      %59 = vector.shape_cast %58 : vector<1xf32> to vector<1x1x1xf32>
      %60 = vector.extract %59[0, 0, 0] : f32 from vector<1x1x1xf32>
      %61 = vector.broadcast %60 : f32 to vector<1x1xf32>
      %c0_30 = arith.constant 0 : index
      %c0_31 = arith.constant 0 : index
      %62 = vector.load %arg6[%c0_30, %c0_31] : memref<8x128xf32, #tpu.memory_space<vmem>>, vector<8x128xf32>
      %63 = vector.shape_cast %62 : vector<8x128xf32> to vector<1x8x128xf32>
      %cst_32 = arith.constant dense<0.000000e+00> : vector<1xf32>
      %64 = vector.multi_reduction <add>, %63, %cst_32 [1, 2] : vector<1x8x128xf32> to vector<1xf32>
      %65 = vector.shape_cast %64 : vector<1xf32> to vector<1x1x1xf32>
      %66 = vector.extract %65[0, 0, 0] : f32 from vector<1x1x1xf32>
      %67 = vector.broadcast %66 : f32 to vector<1x1xf32>
      %68 = arith.divf %61, %67 : vector<1x1xf32>
      %cst_33 = arith.constant 0.000000e+00 : f32
      %69 = vector.broadcast %cst_33 : f32 to vector<1x1xf32>
      %70 = arith.subf %69, %68 : vector<1x1xf32>
      %c0_34 = arith.constant 0 : index
      %c0_35 = arith.constant 0 : index
      %71 = vector.load %arg4[%c0_34, %c0_35] : memref<1x1xf32, #tpu.memory_space<vmem>>, vector<1x1xf32>
      tpu.vector_store %arg4[%c0_34, %c0_35], %70 {strides = array<i32>} : memref<1x1xf32, #tpu.memory_space<vmem>>, vector<1x1xf32>,
    } else {
    }
    return
  }
  func.func @transform_0(%arg0: i32) -> (i32, i32, i32) {
    %c0_i32 = arith.constant 0 : i32
    %c0_i32_0 = arith.constant 0 : i32
    %c0_i32_1 = arith.constant 0 : i32
    return %c0_i32, %arg0, %c0_i32_0 : i32, i32, i32
  }
  func.func @transform_1(%arg0: i32) -> (i32, i32) {
    %c0_i32 = arith.constant 0 : i32
    %c0_i32_0 = arith.constant 0 : i32
    return %arg0, %c0_i32 : i32, i32
  }
  func.func @transform_2(%arg0: i32) -> i32 {
    %c0_i32 = arith.constant 0 : i32
    %c0_i32_0 = arith.constant 0 : i32
    return %c0_i32 : i32
  }
  func.func @transform_3(%arg0: i32) -> (i32, i32) {
    %c0_i32 = arith.constant 0 : i32
    %c0_i32_0 = arith.constant 0 : i32
    %c0_i32_1 = arith.constant 0 : i32
    return %c0_i32, %c0_i32_0 : i32, i32
  }
}

</mosaic_0001>

<bundles_post_ra>
// kernel: tpu_custom_call.1
= control target key start
LH: loop header
LB: loop body
LE: loop exit
PB: predicated region body
PF: predicated region fallthrough
CT: control target
= control target key end

     0   :  { %8 = vsyncpa [#allocation5], 0  ;;  %s307_s0 = inlined_call_operand.hbm [shape: f32[3,8,128], index: 0, kind: input, shape index: {}]   ;;  %s308_s1 = inlined_call_operand.hbm [shape: s32[8,128], index: 1, kind: input, shape index: {}]   ;;  %s309_s2 = inlined_call_operand.vmem [shape: f32[4], index: 2, kind: input, shape index: {}]   ;;  %s310_s3 = inlined_call_operand.hbm [shape: f32[1,1], index: 3, kind: output, shape index: {}]  }
   0x1   :  { %9 = vsyncpa [#allocation9], 0 }
   0x2   :  { %10 = vsyncpa [#allocation7], 0 }
   0x3   :  { %11 = vsyncpa [#allocation6], 0  ;;  %s242_s12 = smov [#allocation4]   ;;  %s156_s16 = scalar_lea.hbm %s307_s0, 384 }
   0x4   :  { %s17_s13 = sshll.u32 %s242_s12, 4  ;;  %p157_p0 = scmp.ne.s32.totalorder %s307_s0, %s156_s16  ;;  %s18_s13 = int_to_ptr.vmem [resolvable:$true] %s17_s13 }
   0x5   :  { %p160_p1 = scmp.lt.u32.totalorder %s156_s16, %s307_s0 }
   0x7   :  { %p162_p2 = pnand %p160_p1, %p157_p0 }
   0x9   :  { %165 = shalt.err (!%p162_p2)
}
   0xa   :  { %s166_s21 = scalar_lea.vmem %s18_s13, 384  ;;  %p171_p4 = scmp.lt.s32.totalorder %s18_s13, %s18_s13 }
   0xb   :  { %p167_p3 = scmp.ne.s32.totalorder %s18_s13, %s166_s21  ;;  %p172_p5 = scmp.lt.s32.totalorder %s166_s21, %s166_s21 }
   0xd   :  { %p173_p6 = por %p172_p5, %p171_p4 }
   0xf   :  { %p174_p7 = pnand %p173_p6, %p167_p3 }
  0x11   :  { %177 = shalt.err (!%p174_p7)
}
  0x12   :  { %s243_s22 = smov 128   ;;  %s244_s23 = smov 8  }
  0x13   :  { %23 = dma.hbm_to_vmem [thread:$0]  %s307_s0, 384, %s18_s13, [#allocation5], %s243_s22, %s243_s22, %s244_s23  }
  0x14   :  { %s245_s26 = smov [#allocation8]   ;;  %s40_s30 = sshll.u32 %s309_s2, 4  ;;  %s41_s30 = int_to_ptr.vmem [resolvable:$true] %s40_s30 }
  0x15   :  { %s30_s27 = sshll.u32 %s245_s26, 4  ;;  %s178_s6 = scalar_lea.hbm %s308_s1, 128  ;;  %s31_s27 = int_to_ptr.vmem [resolvable:$true] %s30_s27 }
  0x16   :  { %p179_p8 = scmp.ne.s32.totalorder %s308_s1, %s178_s6  ;;  %p182_p9 = scmp.lt.u32.totalorder %s178_s6, %s308_s1 }
  0x18   :  { %p184_p10 = pnand %p182_p9, %p179_p8 }
  0x1a   :  { %187 = shalt.err (!%p184_p10)
}
  0x1b   :  { %s188_s0 = scalar_lea.vmem %s31_s27, 128  ;;  %p193_p12 = scmp.lt.s32.totalorder %s31_s27, %s31_s27 }
  0x1c   :  { %p189_p11 = scmp.ne.s32.totalorder %s31_s27, %s188_s0  ;;  %p194_p13 = scmp.lt.s32.totalorder %s188_s0, %s188_s0 }
  0x1e   :  { %p195_p0 = por %p194_p13, %p193_p12 }
  0x20   :  { %p196_p1 = pnand %p195_p0, %p189_p11 }
  0x22   :  { %199 = shalt.err (!%p196_p1)
}
  0x23   :  { %33 = dma.hbm_to_vmem [thread:$0]  %s308_s1, 128, %s31_s27, [#allocation9]  }
  0x24   :  { %s200_s12 = scalar_lea.vmem %s41_s30, 16  ;;  %p205_p3 = scmp.lt.s32.totalorder %s41_s30, %s41_s30 }
  0x25   :  { %p201_p2 = scmp.ne.s32.totalorder %s41_s30, %s200_s12  ;;  %p206_p4 = scmp.lt.s32.totalorder %s200_s12, %s200_s12 }
  0x27   :  { %p207_p5 = por %p206_p4, %p205_p3 }
  0x29   :  { %p208_p6 = pnand %p207_p5, %p201_p2 }
  0x2b   :  { %211 = shalt.err (!%p208_p6)
}
  0x2c   :  { %s246_s13 = smov [#allocation10]  }
  0x2d   :  { %43 = dma.vmem_to_smem %s41_s30, 16, %s246_s13, [#allocation7]  }
  0x2e   :  { %234 = dma.done.wait [#allocation5], 384  }
  0x2f   :  { %235 = vsyncadd [#allocation5], 4294966912 }
  0x30   :  { %236 = dma.done.wait [#allocation9], 128  }
  0x31   :  { %237 = vsyncadd [#allocation9], 4294967168 }
  0x32   :  { %238 = dma.done.wait [#allocation7], 16  }
  0x33   :  { %239 = vsyncadd [#allocation7], 4294967280 }
  0x34   :  { %53 = sfence }
  0x35   :  { %s66_s14 = sld [smem:[#allocation10]]  ;;  %s141_s15 = sld [smem:[#allocation10 + $0x1]]  ;;  %v60_v0 = vld [vmem:[#allocation8] sm:$0xff]  ;;  %v61_v1 = vld [vmem:[#allocation4] sm:$0xff]  ;;  %v63_v2 = vld [vmem:[#allocation4 + $0x8] sm:$0xff]  ;;  %vm122_vm4 = vcmask 0  }
  0x36   :  { %s142_s16 = sld [smem:[#allocation10 + $0x2]]  ;;  %s143_s1 = sld [smem:[#allocation10 + $0x3]]  ;;  %v65_v3 = vld [vmem:[#allocation4 + $0x10] sm:$0xff]  ;;  %vm82_vm0 = vcmp.eq.s32.totalorder %v60_v0, 3  ;;  %vm73_vm1 = vcmp.eq.s32.totalorder %v60_v0, 1  ;;  %vm76_vm2 = vcmp.eq.s32.totalorder %v60_v0, 2 }
  0x37   :  { %vm70_vm3 = vcmp.eq.s32.totalorder %v60_v0, 0  ;;  %s247_s19 = smov [#allocation11]  }
  0x38   :  { %s130_s20 = sshll.u32 %s247_s19, 4  ;;  %s131_s20 = int_to_ptr.vmem [resolvable:$true] %s130_s20 }
  0x39   :  { %s212_s21 = scalar_lea.vmem %s131_s20, 16  ;;  %s216_s22 = scalar_lea.vmem %s131_s20, 32 }
  0x3a   :  { %p213_p7 = scmp.ne.s32.totalorder %s131_s20, %s212_s21  ;;  %p217_p8 = scmp.lt.s32.totalorder %s131_s20, %s131_s20 }
  0x3b   :  { %v71_v4 = vstv %s66_s14  ;;  %v74_v5 = vstv %s141_s15  ;;  %p218_p9 = scmp.lt.s32.totalorder %s216_s22, %s212_s21 }
  0x3c   :  { %v77_v6 = vstv %s142_s16  ;;  %v72_v7 = vmul.f32 %v71_v4, %v61_v1  ;;  %v75_v8 = vmul.f32 %v74_v5, %v63_v2  ;;  %v83_v10 = vstv %s143_s1 }
  0x3d   :  { %v78_v9 = vmul.f32 %v77_v6, %v65_v3  ;;  %v84_v11 = vsel %vm82_vm0, %v83_v10, 0.0  ;;  %p219_p10 = por %p218_p9, %p217_p8 }
  0x3e   :  { %v85_v13 = vsel %vm76_vm2, %v77_v6, %v84_v11 }
  0x3f   :  { %v79_v12 = vsel %vm76_vm2, %v78_v9, 0.0  ;;  %v86_v15 = vsel %vm73_vm1, %v74_v5, %v85_v13  ;;  %p220_p11 = pnand %p219_p10, %p213_p7 }
  0x40   :  { %v80_v14 = vsel %vm73_vm1, %v75_v8, %v79_v12  ;;  %v87_v17 = vsel %vm70_vm3, %v71_v4, %v86_v15 }
  0x41   :  { %v81_v16 = vsel %vm70_vm3, %v72_v7, %v80_v14 }
  0x42   :  { %98 = vadd.xlane.f32.xlu0 %v81_v16 }
  0x46   :  { %109 = vadd.xlane.f32.xlu0 %v87_v17 }
  0xcf   :  { %v99_v18 = vpop.xlane.xlu0 %98 }
  0xd0   :  { %v100_v19 = vrot.slane %v99_v18, 4 }
  0xd2   :  { %v101_v20 = vadd.f32 %v100_v19, %v99_v18 }
  0xd3   :  { %v110_v21 = vpop.xlane.xlu0 %109 }
  0xd4   :  { %v102_v22 = vrot.slane %v101_v20, 2  ;;  %v111_v23 = vrot.slane %v110_v21, 4 }
  0xd6   :  { %v112_v24 = vadd.f32 %v111_v23, %v110_v21  ;;  %v103_v25 = vadd.f32 %v102_v22, %v101_v20 }
  0xd8   :  { %v113_v26 = vrot.slane %v112_v24, 2  ;;  %v104_v27 = vrot.slane %v103_v25, 1 }
  0xda   :  { %v114_v28 = vadd.f32 %v113_v26, %v112_v24  ;;  %v105_v29 = vadd.f32 %v104_v27, %v103_v25 }
  0xdc   :  { %144 = vpush %v105_v29  ;;  %v115_v30 = vrot.slane %v114_v28, 1 }
  0xde   :  { %v116_v31 = vadd.f32 %v115_v30, %v114_v28 }
  0xe0   :  { %146 = vpush %v116_v31 }
 0x10d   :  { %s145_s17 = spop %144 }
 0x10e   :  { %v107_v34 = vstv %s145_s17 }
 0x111   :  { %s147_s18 = spop %146 }
 0x112   :  { %v118_v32 = vstv %s147_s18 }
 0x113   :  { %154 = vrcp.f32 %v118_v32 }
 0x11d   :  { %v155_v33 = vpop.eup %154 }
 0x11e   :  { %v120_v35 = vmul.f32 %v155_v33, %v107_v34 }
 0x120   :  { %v121_v36 = vsub.f32 0.0, %v120_v35 }
 0x122   :  { %123 = vst.msk [vmem:[#allocation11] sm:$0x1] %vm122_vm4, %v121_v36 }
 0x123   :  { %223 = shalt.err (!%p220_p11)
}
 0x124   :  { %s224_s25 = scalar_lea.hbm %s310_s3, 16 }
 0x125   :  { %p225_p12 = scmp.ne.s32.totalorder %s310_s3, %s224_s25  ;;  %p228_p13 = scmp.lt.u32.totalorder %s224_s25, %s310_s3 }
 0x127   :  { %p230_p0 = pnand %p228_p13, %p225_p12 }
 0x129   :  { %233 = shalt.err (!%p230_p0)
}
 0x12a   :  { %133 = dma.vmem_to_hbm [thread:$0]  %s131_s20, 16, %s310_s3, [#allocation6]  }
 0x12b   :  { %240 = dma.done.wait [#allocation6], 16  }
 0x12c   :  { %241 = vsyncadd [#allocation6], 4294967280 }
 0x12d   :  { %137 = vsyncpa [#allocation5], 1 }
 0x12e   :  { %138 = vsyncpa [#allocation9], 1 }
 0x12f   :  { %139 = vsyncpa [#allocation6], 1 }
 0x130   :  { %140 = vsyncpa [#allocation7], 1 }

</bundles_post_ra>
